<compile_context>
chip_gen: v7x
topology: tpu7x:2x2x1
jax: 0.10.0
libtpu: 0.0.40
codegen_flags: <defaults>
</compile_context>

<pallas_src>
import functools

import jax
import jax.numpy as jnp
from jax import lax
from jax.experimental import pallas as pl
from jax.experimental.pallas import tpu as pltpu


def _attention_kernel(x_ref, gamma_ref, beta_ref, wqkv_ref, wo_ref, out_ref,
                      *, heads, eps):
    # x_ref block: (N, D)  (leading batch dim squeezed away by the BlockSpec)
    x = x_ref[...].astype(jnp.float32)

    # ---- LayerNorm(dim): gamma * (x - mu) / sqrt(var + eps) + beta (f32) ----
    mu = jnp.mean(x, axis=-1, keepdims=True)
    var = jnp.mean(jnp.square(x - mu), axis=-1, keepdims=True)
    xn = (x - mu) * lax.rsqrt(var + eps)
    xn = xn * gamma_ref[0] + beta_ref[0]                          # (N, D)

    # ---- fused QKV projection, head-batched (bf16 MXU, f32 accumulation) ----
    # wqkv_ref: (3H, D, dh) = [q-heads | k-heads | v-heads], softmax scale
    # pre-folded into the q slice.  Single batched dot_general; the broadcast
    # of the normalized activations is hoisted (one broadcast_in_dim).
    three_h = 3 * heads
    xb = jnp.broadcast_to(xn.astype(jnp.bfloat16), (three_h,) + xn.shape)  # (3H, N, D)
    qkv = jnp.einsum('hnd,hdk->hnk', xb, wqkv_ref[...],
                     preferred_element_type=jnp.float32)          # (3H, N, dh)
    # Static slices along the leading (non-lane/non-sublane) axis: free.
    q = qkv[:heads]                                               # (H, N, dh), scale folded
    k = qkv[heads:2 * heads]                                      # (H, N, dh)
    v = qkv[2 * heads:]                                           # (H, N, dh)

    # ---- scaled-dot-product attention, softmax in float32 ----
    s = jnp.einsum('hqd,hkd->hqk', q.astype(jnp.bfloat16), k.astype(jnp.bfloat16),
                   preferred_element_type=jnp.float32)            # (H, N, N)
    s = s - jnp.max(s, axis=-1, keepdims=True)
    e = jnp.exp(s)
    # divide -> EUP approximate reciprocal + VPU multiply (keeps VALU free)
    attn = e * pl.reciprocal(jnp.sum(e, axis=-1, keepdims=True), approx=True)

    o = jnp.einsum('hqk,hkd->hqd', attn.astype(jnp.bfloat16), v.astype(jnp.bfloat16),
                   preferred_element_type=jnp.float32)            # (H, N, dh)

    # ---- output projection, head-batched then summed over heads ----
    # sum_h  o[h] @ Wo[h]  ==  concat_heads(o) @ Wo   (no concatenate needed)
    y = jnp.einsum('hnd,hdk->hnk', o.astype(jnp.bfloat16), wo_ref[...],
                   preferred_element_type=jnp.float32)            # (H, N, D)
    out_ref[...] = jnp.sum(y, axis=0).astype(out_ref.dtype)       # (N, D), lane-dense store


def attention_forward(x, gamma, beta, wq, wk, wv, wo, *, heads):
    B, N, D = x.shape
    dh = D // heads
    scale = dh ** (-0.5)

    # Pre-arrange weights head-major *outside* the kernel (free XLA reshapes):
    #   to_q / to_kv weights (D, H*dh) -> (H, D, dh), stacked to (3H, D, dh);
    #   to_out (H*dh, D) -> (H, dh, D).
    # Softmax scale folded into the q slice; bf16 halves the weight DMA traffic
    # and feeds the MXU at full rate on v5e/v6e/v7x.
    to_head = lambda w: w.reshape(D, heads, dh).transpose(1, 0, 2)
    wqkv_h = jnp.concatenate(
        [to_head(wq * scale), to_head(wk), to_head(wv)], axis=0
    ).astype(jnp.bfloat16)                                        # (3H, D, dh)
    wo_h = wo.reshape(heads, dh, D).astype(jnp.bfloat16)          # (H, dh, D)

    kernel = functools.partial(_attention_kernel, heads=heads, eps=1e-5)
    wmap3 = lambda b: (0, 0, 0)   # constant index_map: weights stay VMEM-resident
    wmap2 = lambda b: (0, 0)

    return pl.pallas_call(
        kernel,
        out_shape=jax.ShapeDtypeStruct((B, N, D), x.dtype),
        grid=(B,),
        in_specs=[
            pl.BlockSpec((None, N, D), lambda b: (b, 0, 0)),      # x, per-batch tile (squeezed)
            pl.BlockSpec((1, D), wmap2),                          # gamma
            pl.BlockSpec((1, D), wmap2),                          # beta
            pl.BlockSpec((3 * heads, D, dh), wmap3),              # fused Wqkv^T, head-major
            pl.BlockSpec((heads, dh, D), wmap3),                  # Wo^T, head-major
        ],
        out_specs=pl.BlockSpec((None, N, D), lambda b: (b, 0, 0)),
        compiler_params=pltpu.CompilerParams(
            # batch axis is independent -> megacore-shardable on v7x
            dimension_semantics=("parallel",)),
    )(x, gamma, beta, wqkv_h, wo_h)


def attention_reference(x, gamma, beta, wq, wk, wv, wo, *, heads):
    """Pure-JAX (f32) reference mirroring the PyTorch forward."""
    B, N, D = x.shape
    dh = D // heads
    mu = jnp.mean(x, axis=-1, keepdims=True)
    var = jnp.mean((x - mu) ** 2, axis=-1, keepdims=True)
    xn = (x - mu) / jnp.sqrt(var + 1e-5) * gamma + beta
    q, k, v = xn @ wq, xn @ wk, xn @ wv
    split = lambda t: t.reshape(B, N, heads, dh).transpose(0, 2, 1, 3)
    q, k, v = map(split, (q, k, v))
    dots = jnp.einsum("bhid,bhjd->bhij", q, k) * dh ** (-0.5)
    attn = jax.nn.softmax(dots.astype(jnp.float32), axis=-1)
    o = jnp.einsum("bhij,bhjd->bhid", attn, v)
    o = o.transpose(0, 2, 1, 3).reshape(B, N, D)
    return o @ wo


if __name__ == "__main__":
    # Small shapes consistent with the module (dim divisible by heads).
    # D = 128 keeps the activation/output last dim a full 128-lane width
    # (unmasked vector stores) while staying tiny.
    B, N, DIM, HEADS = 2, 16, 128, 4
    INNER = DIM  # dim_head * heads

    key = jax.random.PRNGKey(0)
    kx, kq, kkv, ko = jax.random.split(key, 4)

    x = jax.random.normal(kx, (B, N, DIM), dtype=jnp.float32)

    # Deterministic parameter init (Linear weights ~ N(0, 0.02), LN gamma=1, beta=0).
    wq = 0.02 * jax.random.normal(kq, (DIM, INNER), dtype=jnp.float32)
    wkv = 0.02 * jax.random.normal(kkv, (DIM, 2 * INNER), dtype=jnp.float32)
    wk, wv = wkv[:, :INNER], wkv[:, INNER:]
    wo = 0.02 * jax.random.normal(ko, (INNER, DIM), dtype=jnp.float32)
    gamma = jnp.ones((1, DIM), dtype=jnp.float32)
    beta = jnp.zeros((1, DIM), dtype=jnp.float32)
    # TODO(synk): null_kv / q_scale / k_scale params exist in __init__ but are unused
    # when add_null_kv=False and qk_norm=False (the defaults), so they are omitted.

    out = attention_forward(x, gamma, beta, wq, wk, wv, wo, heads=HEADS)
    out = jax.block_until_ready(out)

    ref = attention_reference(x, gamma, beta, wq, wk, wv, wo, heads=HEADS)
    assert out.shape == (B, N, DIM)
    # bf16 MXU operands (f32 accumulation) -> compare against the f32 reference
    # with a bf16-appropriate tolerance.
    max_err = float(jnp.max(jnp.abs(out - ref)))
    assert jnp.allclose(out, ref, atol=5e-3, rtol=5e-3), (
        f"mismatch vs reference, max abs err={max_err}")

    print("KERNEL_OK")
</pallas_src>

<mosaic_0001>
module attributes {stable_mosaic.version = 11 : i64} {
  func.func @_attention_kernel(%arg0: i32, %arg1: memref<1x16x128xf32, #tpu.memory_space<vmem>>, %arg2: memref<1x128xf32, #tpu.memory_space<vmem>>, %arg3: memref<1x128xf32, #tpu.memory_space<vmem>>, %arg4: memref<12x128x32xbf16, #tpu.memory_space<vmem>>, %arg5: memref<4x32x128xbf16, #tpu.memory_space<vmem>>, %arg6: memref<1x16x128xf32, #tpu.memory_space<vmem>>) attributes {dimension_semantics = [#tpu.dimension_semantics<parallel>], iteration_bounds = array<i64: 2>, scalar_prefetch = 0 : i64, scratch_operands = 0 : i64, tpu.core_type = #tpu.core_type<tc>, window_params = [{transform_indices = @transform_0, window_bounds = array<i64: 1, 16, 128>}, {pipeline_mode = #tpu.pipeline_mode<synchronous>, transform_indices = @transform_1, window_bounds = array<i64: 1, 128>}, {pipeline_mode = #tpu.pipeline_mode<synchronous>, transform_indices = @transform_2, window_bounds = array<i64: 1, 128>}, {pipeline_mode = #tpu.pipeline_mode<synchronous>, transform_indices = @transform_3, window_bounds = array<i64: 12, 128, 32>}, {pipeline_mode = #tpu.pipeline_mode<synchronous>, transform_indices = @transform_4, window_bounds = array<i64: 4, 32, 128>}, {transform_indices = @transform_5, window_bounds = array<i64: 1, 16, 128>}]} {
    %c0 = arith.constant 0 : index
    %c0_0 = arith.constant 0 : index
    %c0_1 = arith.constant 0 : index
    %0 = vector.load %arg1[%c0, %c0_0, %c0_1] : memref<1x16x128xf32, #tpu.memory_space<vmem>>, vector<1x16x128xf32>
    %1 = vector.shape_cast %0 : vector<1x16x128xf32> to vector<16x128xf32>
    %cst = arith.constant dense<0.000000e+00> : vector<16xf32>
    %2 = vector.multi_reduction <add>, %1, %cst [1] : vector<16x128xf32> to vector<16xf32>
    %3 = vector.shape_cast %2 : vector<16xf32> to vector<16x1xf32>
    %cst_2 = arith.constant 1.280000e+02 : f32
    %4 = vector.broadcast %cst_2 : f32 to vector<16x1xf32>
    %5 = arith.divf %3, %4 : vector<16x1xf32>
    %6 = vector.broadcast %5 : vector<16x1xf32> to vector<16x128xf32>
    %7 = arith.subf %1, %6 : vector<16x128xf32>
    %8 = arith.mulf %7, %7 : vector<16x128xf32>
    %cst_3 = arith.constant dense<0.000000e+00> : vector<16xf32>
    %9 = vector.multi_reduction <add>, %8, %cst_3 [1] : vector<16x128xf32> to vector<16xf32>
    %10 = vector.shape_cast %9 : vector<16xf32> to vector<16x1xf32>
    %cst_4 = arith.constant 1.280000e+02 : f32
    %11 = vector.broadcast %cst_4 : f32 to vector<16x1xf32>
    %12 = arith.divf %10, %11 : vector<16x1xf32>
    %13 = vector.broadcast %5 : vector<16x1xf32> to vector<16x128xf32>
    %14 = arith.subf %1, %13 : vector<16x128xf32>
    %cst_5 = arith.constant 9.99999974E-6 : f32
    %15 = vector.broadcast %cst_5 : f32 to vector<16x1xf32>
    %16 = arith.addf %12, %15 : vector<16x1xf32>
    %17 = math.rsqrt %16 : vector<16x1xf32>
    %18 = vector.broadcast %17 : vector<16x1xf32> to vector<16x128xf32>
    %19 = arith.mulf %14, %18 : vector<16x128xf32>
    %c0_6 = arith.constant 0 : index
    %c0_7 = arith.constant 0 : index
    %20 = vector.load %arg2[%c0_6, %c0_7] : memref<1x128xf32, #tpu.memory_space<vmem>>, vector<1x128xf32>
    %21 = vector.shape_cast %20 : vector<1x128xf32> to vector<128xf32>
    %22 = vector.shape_cast %21 : vector<128xf32> to vector<1x128xf32>
    %23 = vector.broadcast %22 : vector<1x128xf32> to vector<16x128xf32>
    %24 = arith.mulf %19, %23 : vector<16x128xf32>
    %c0_8 = arith.constant 0 : index
    %c0_9 = arith.constant 0 : index
    %25 = vector.load %arg3[%c0_8, %c0_9] : memref<1x128xf32, #tpu.memory_space<vmem>>, vector<1x128xf32>
    %26 = vector.shape_cast %25 : vector<1x128xf32> to vector<128xf32>
    %27 = vector.shape_cast %26 : vector<128xf32> to vector<1x128xf32>
    %28 = vector.broadcast %27 : vector<1x128xf32> to vector<16x128xf32>
    %29 = arith.addf %24, %28 : vector<16x128xf32>
    %30 = arith.truncf %29 : vector<16x128xf32> to vector<16x128xbf16>
    %31 = vector.shape_cast %30 : vector<16x128xbf16> to vector<1x16x128xbf16>
    %32 = vector.broadcast %31 : vector<1x16x128xbf16> to vector<12x16x128xbf16>
    %c0_10 = arith.constant 0 : index
    %c0_11 = arith.constant 0 : index
    %c0_12 = arith.constant 0 : index
    %33 = vector.load %arg4[%c0_10, %c0_11, %c0_12] : memref<12x128x32xbf16, #tpu.memory_space<vmem>>, vector<12x128x32xbf16>
    "tpu.trace_start"() <{level = 10 : i32, message = "hnd,hdk->hnk"}> : () -> ()
    %cst_13 = arith.constant dense<0.000000e+00> : vector<12x16x32xf32>
    %34 = tpu.matmul %32, %33, %cst_13 {dimension_numbers = #tpu.dot_dimension_numbers<[2], [1], [1], [2], [0, 0, 0, 1, 1, 2], [0], [0]>} : vector<12x16x128xbf16>, vector<12x128x32xbf16>, vector<12x16x32xf32> -> vector<12x16x32xf32>
    "tpu.trace_stop"() : () -> ()
    %35 = vector.extract_strided_slice %34 {offsets = [0, 0, 0], sizes = [4, 16, 32], strides = [1, 1, 1]} : vector<12x16x32xf32> to vector<4x16x32xf32>
    %36 = vector.extract_strided_slice %34 {offsets = [4, 0, 0], sizes = [4, 16, 32], strides = [1, 1, 1]} : vector<12x16x32xf32> to vector<4x16x32xf32>
    %37 = vector.extract_strided_slice %34 {offsets = [8, 0, 0], sizes = [4, 16, 32], strides = [1, 1, 1]} : vector<12x16x32xf32> to vector<4x16x32xf32>
    %38 = arith.truncf %35 : vector<4x16x32xf32> to vector<4x16x32xbf16>
    %39 = arith.truncf %36 : vector<4x16x32xf32> to vector<4x16x32xbf16>
    "tpu.trace_start"() <{level = 10 : i32, message = "hqd,hkd->hqk"}> : () -> ()
    %cst_14 = arith.constant dense<0.000000e+00> : vector<4x16x16xf32>
    %40 = tpu.matmul %38, %39, %cst_14 {dimension_numbers = #tpu.dot_dimension_numbers<[2], [2], [1], [1], [0, 0, 0, 1, 1, 1], [0], [0]>} : vector<4x16x32xbf16>, vector<4x16x32xbf16>, vector<4x16x16xf32> -> vector<4x16x16xf32>
    "tpu.trace_stop"() : () -> ()
    %cst_15 = arith.constant dense<0xFF800000> : vector<4x16xf32>
    %41 = vector.multi_reduction <maximumf>, %40, %cst_15 [2] : vector<4x16x16xf32> to vector<4x16xf32>
    %42 = vector.shape_cast %41 : vector<4x16xf32> to vector<4x16x1xf32>
    %43 = vector.broadcast %42 : vector<4x16x1xf32> to vector<4x16x16xf32>
    %44 = arith.subf %40, %43 : vector<4x16x16xf32>
    %45 = math.exp %44 : vector<4x16x16xf32>
    %cst_16 = arith.constant dense<0.000000e+00> : vector<4x16xf32>
    %46 = vector.multi_reduction <add>, %45, %cst_16 [2] : vector<4x16x16xf32> to vector<4x16xf32>
    %47 = vector.shape_cast %46 : vector<4x16xf32> to vector<4x16x1xf32>
    %48 = tpu.reciprocal %47 {approx = true} : vector<4x16x1xf32> -> vector<4x16x1xf32>
    %49 = vector.broadcast %48 : vector<4x16x1xf32> to vector<4x16x16xf32>
    %50 = arith.mulf %45, %49 : vector<4x16x16xf32>
    %51 = arith.truncf %50 : vector<4x16x16xf32> to vector<4x16x16xbf16>
    %52 = arith.truncf %37 : vector<4x16x32xf32> to vector<4x16x32xbf16>
    "tpu.trace_start"() <{level = 10 : i32, message = "hqk,hkd->hqd"}> : () -> ()
    %cst_17 = arith.constant dense<0.000000e+00> : vector<4x16x32xf32>
    %53 = tpu.matmul %51, %52, %cst_17 {dimension_numbers = #tpu.dot_dimension_numbers<[2], [1], [1], [2], [0, 0, 0, 1, 1, 2], [0], [0]>} : vector<4x16x16xbf16>, vector<4x16x32xbf16>, vector<4x16x32xf32> -> vector<4x16x32xf32>
    "tpu.trace_stop"() : () -> ()
    %54 = arith.truncf %53 : vector<4x16x32xf32> to vector<4x16x32xbf16>
    %c0_18 = arith.constant 0 : index
    %c0_19 = arith.constant 0 : index
    %c0_20 = arith.constant 0 : index
    %55 = vector.load %arg5[%c0_18, %c0_19, %c0_20] : memref<4x32x128xbf16, #tpu.memory_space<vmem>>, vector<4x32x128xbf16>
    "tpu.trace_start"() <{level = 10 : i32, message = "hnd,hdk->hnk"}> : () -> ()
    %cst_21 = arith.constant dense<0.000000e+00> : vector<4x16x128xf32>
    %56 = tpu.matmul %54, %55, %cst_21 {dimension_numbers = #tpu.dot_dimension_numbers<[2], [1], [1], [2], [0, 0, 0, 1, 1, 2], [0], [0]>} : vector<4x16x32xbf16>, vector<4x32x128xbf16>, vector<4x16x128xf32> -> vector<4x16x128xf32>
    "tpu.trace_stop"() : () -> ()
    %cst_22 = arith.constant dense<0.000000e+00> : vector<16x128xf32>
    %57 = vector.multi_reduction <add>, %56, %cst_22 [0] : vector<4x16x128xf32> to vector<16x128xf32>
    %c0_23 = arith.constant 0 : index
    %c0_24 = arith.constant 0 : index
    %c0_25 = arith.constant 0 : index
    %58 = vector.load %arg6[%c0_23, %c0_24, %c0_25] : memref<1x16x128xf32, #tpu.memory_space<vmem>>, vector<1x16x128xf32>
    %59 = vector.shape_cast %58 : vector<1x16x128xf32> to vector<16x128xf32>
    %60 = vector.shape_cast %57 : vector<16x128xf32> to vector<1x16x128xf32>
    tpu.vector_store %arg6[%c0_23, %c0_24, %c0_25], %60 {strides = array<i32>} : memref<1x16x128xf32, #tpu.memory_space<vmem>>, vector<1x16x128xf32>,
    return
  }
  func.func @transform_0(%arg0: i32) -> (i32, i32, i32) {
    %c0_i32 = arith.constant 0 : i32
    %c0_i32_0 = arith.constant 0 : i32
    %c0_i32_1 = arith.constant 0 : i32
    return %arg0, %c0_i32, %c0_i32_0 : i32, i32, i32
  }
  func.func @transform_1(%arg0: i32) -> (i32, i32) {
    %c0_i32 = arith.constant 0 : i32
    %c0_i32_0 = arith.constant 0 : i32
    %c0_i32_1 = arith.constant 0 : i32
    return %c0_i32, %c0_i32_0 : i32, i32
  }
  func.func @transform_2(%arg0: i32) -> (i32, i32) {
    %c0_i32 = arith.constant 0 : i32
    %c0_i32_0 = arith.constant 0 : i32
    %c0_i32_1 = arith.constant 0 : i32
    return %c0_i32, %c0_i32_0 : i32, i32
  }
  func.func @transform_3(%arg0: i32) -> (i32, i32, i32) {
    %c0_i32 = arith.constant 0 : i32
    %c0_i32_0 = arith.constant 0 : i32
    %c0_i32_1 = arith.constant 0 : i32
    %c0_i32_2 = arith.constant 0 : i32
    return %c0_i32, %c0_i32_0, %c0_i32_1 : i32, i32, i32
  }
  func.func @transform_4(%arg0: i32) -> (i32, i32, i32) {
    %c0_i32 = arith.constant 0 : i32
    %c0_i32_0 = arith.constant 0 : i32
    %c0_i32_1 = arith.constant 0 : i32
    %c0_i32_2 = arith.constant 0 : i32
    return %c0_i32, %c0_i32_0, %c0_i32_1 : i32, i32, i32
  }
  func.func @transform_5(%arg0: i32) -> (i32, i32, i32) {
    %c0_i32 = arith.constant 0 : i32
    %c0_i32_0 = arith.constant 0 : i32
    %c0_i32_1 = arith.constant 0 : i32
    return %arg0, %c0_i32, %c0_i32_0 : i32, i32, i32
  }
}

</mosaic_0001>

<bundles_post_ra>
// kernel: tpu_custom_call.1
= control target key start
LH: loop header
LB: loop body
LE: loop exit
PB: predicated region body
PF: predicated region fallthrough
CT: control target
= control target key end

     0   :  { %10 = vsyncpa [#allocation3], 0  ;;  %s3853_s0 = inlined_call_operand.vmem [shape: f32[2,16,128], index: 0, kind: input, shape index: {}]   ;;  %s3854_s1 = inlined_call_operand.vmem [shape: f32[1,128], index: 1, kind: input, shape index: {}]   ;;  %s3855_s2 = inlined_call_operand.vmem [shape: f32[1,128], index: 2, kind: input, shape index: {}]   ;;  %s3856_s3 = inlined_call_operand.vmem [shape: bf16[12,128,32], index: 3, kind: input, shape index: {}]   ;;  %s3857_s4 = inlined_call_operand.vmem [shape: bf16[4,32,128], index: 4, kind: input, shape index: {}]   ;;  %s3858_s5 = inlined_call_operand.hbm [shape: f32[2,16,128], index: 5, kind: output, shape index: {}]  }
   0x1   :  { %12 = vsyncpa [#allocation3 + $0x1], 0  ;;  %s3208_s18 = smov 0   ;;  %s3210_s19 = smov 0  }
   0x2   :  { %s3212_s20 = smov 0   ;;  %s3214_s21 = smov 0  }
   0x3 LB: > { %s3229_s22 = sadd.s32 4294967295, %s3171_s21   ;;  %s2326_s23 = sadd.s32 4294967294, %s3171_s21   ;;  %s3171_s21 = sphi %s3214_s21, %s3864_s21   ;;  %s3167_s20 = sphi %s3212_s20, %s3863_s20   ;;  %s3163_s19 = sphi %s3210_s19, %s3862_s19   ;;  %s3159_s18 = sphi %s3208_s18, %s3861_s18  }
   0x4   : > { %s3233_s24 = sadd.s32 1, %s3171_s21   ;;  %s135_s25 = sadd.s32 1, %s3167_s20 }
   0x5   : > { %s132_s26 = ssub.s32 %s3171_s21, %s3233_s24  ;;  %p145_p0 = scmp.ne.s32.totalorder %s3167_s20, %s3163_s19 }
   0x6   : > { %p133_p1 = scmp.eq.s32.totalorder %s132_s26, 0  ;;  %p146_p2 = scmp.eq.s32.totalorder %s3229_s22, 1 }
   0x7   : > { %p151_p3 = scmp.ne.s32.totalorder %s3163_s19, %s3159_s18  ;;  %p152_p4 = scmp.eq.s32.totalorder %s2326_s23, 1 }
   0x8   : > { %s3244_s27 = scalar_select %p133_p1, %s3167_s20, %s135_s25  }
   0x9   : > { %p3246_p5 = por %p146_p2, %p145_p0  ;;  %p3250_p6 = por %p152_p4, %p151_p3 }
   0xa   : > { %p2329_p7 = scmp.ge.s32.totalorder %s3171_s21, 1  ;;  %p190_p8 = scmp.lt.s32.totalorder %s3171_s21, 3 }
   0xc   : > { %p191_p9 = pnand %p2329_p7, %p190_p8 }
   0xd   : > { %p218_p10 = scmp.lt.s32.totalorder (!%p191_p9), %s3229_s22, 1  ;;  %v2969_v2 = vld [vmem:[%s3856_s3] sm:$0xff] (!%p191_p9)   ;;  %v3173_v4 = vmov (!%p191_p9), 0.0   ;;  %v2971_v5 = vld [vmem:[%s3856_s3 + $0x8] sm:$0xff] (!%p191_p9)   ;;  %v2973_v15 = vld [vmem:[%s3856_s3 + $0x10] sm:$0xff] (!%p191_p9)   ;;  %vm3174_vm0 = vmmov (!%p191_p9), 0  }
   0xe   : > { %194 = sbr.rel (%p191_p9) target bundleno = 1650 (0x672), region = 40  ;;  %v2970_v3 = vld [vmem:[%s3856_s3 + $0x40] sm:$0xff] (!%p191_p9)   ;;  %2594 = vmatprep.subr.bf16.mxu0 (!%p191_p9), %v3173_v4  ;;  %2614 = vmatprep.subr.bf16.mxu1 (!%p191_p9), %v3173_v4  ;;  %v2972_v6 = vld [vmem:[%s3856_s3 + $0x48] sm:$0xff] (!%p191_p9)   ;;  %v2974_v16 = vld [vmem:[%s3856_s3 + $0x50] sm:$0xff] (!%p191_p9)   ;;  %vm1536_vm1 = vcmask (!%p191_p9), 261120   ;;  %vm1725_vm2 = vcmask (!%p191_p9), 130048  }
   0xf   : > { %2595 = vmatpush3.bf16.msra.mxu0 (!%p191_p9), %v2969_v2  ;;  %2615 = vmatpush3.bf16.msra.mxu1 (!%p191_p9), %v2970_v3  ;;  %v2975_v17 = vld [vmem:[%s3856_s3 + $0x18] sm:$0xff] (!%p191_p9)   ;;  %v2977_v19 = vld [vmem:[%s3856_s3 + $0x20] sm:$0xff] (!%p191_p9)   ;;  %v2979_v21 = vld [vmem:[%s3856_s3 + $0x28] sm:$0xff] (!%p191_p9)   ;;  %s215_s14 = sand.u32 (!%p191_p9), 1, %s3163_s19   ;;  %s2457_s23 = sshll.u32 (!%p191_p9), %s3229_s22, 8 }
  0x10   : > { %2596 = vmatprep.subr.bf16.mxu0 (!%p191_p9), %v3173_v4  ;;  %2616 = vmatprep.subr.bf16.mxu1 (!%p191_p9), %v3173_v4  ;;  %v2976_v18 = vld [vmem:[%s3856_s3 + $0x58] sm:$0xff] (!%p191_p9)   ;;  %v2978_v20 = vld [vmem:[%s3856_s3 + $0x60] sm:$0xff] (!%p191_p9)   ;;  %v2980_v22 = vld [vmem:[%s3856_s3 + $0x68] sm:$0xff] (!%p191_p9)   ;;  %s2330_s15 = sshll.u32 (!%p191_p9), %s215_s14, 4 }
  0x11   : > { %v2981_v23 = vld [vmem:[%s3856_s3 + $0x30] sm:$0xff] (!%p191_p9)   ;;  %v2983_v25 = vld [vmem:[%s3856_s3 + $0x38] sm:$0xff] (!%p191_p9)   ;;  %2610 = vmatprep.mubr.msk.bf16.mxu0 (!%p191_p9), %vm3174_vm0, %v3173_v4  ;;  %2630 = vmatprep.mubr.msk.bf16.mxu1 (!%p191_p9), %vm3174_vm0, %v3173_v4  ;;  %v2333_v35 = vld [vmem:[%s3854_s1] ss:$0 sm:$0xff] (!%p191_p9)  ;;  %s217_s16 = scalar_lea.vmem (!%p191_p9), [#allocation2], %s2330_s15 }
  0x12   : > { %v2982_v24 = vld [vmem:[%s3856_s3 + $0x70] sm:$0xff] (!%p191_p9)   ;;  %v2984_v26 = vld [vmem:[%s3856_s3 + $0x78] sm:$0xff] (!%p191_p9)   ;;  %v2334_v39 = vld [vmem:[%s3855_s2] ss:$0 sm:$0xff] (!%p191_p9)  ;;  %s2264_s17 = sshll.u32 (!%p191_p9), %s217_s16, 4  ;;  %s3805_s17 = int_to_ptr.vmem [resolvable:$true] %s2264_s17 }
  0x13   : > { %2597 = vmatpush3.bf16.msra.mxu0 (!%p191_p9), %v2971_v5  ;;  %2617 = vmatpush3.bf16.msra.mxu1 (!%p191_p9), %v2972_v6  ;;  %v2985_v43 = vld [vmem:[%s3856_s3 + $0x80] sm:$0xff] (!%p191_p9)   ;;  %v2987_v46 = vld [vmem:[%s3856_s3 + $0x88] sm:$0xff] (!%p191_p9)   ;;  %v2989_v48 = vld [vmem:[%s3856_s3 + $0x90] sm:$0xff] (!%p191_p9)   ;;  %s3109_s7 = scalar_lea.vmem (!%p191_p9), %s3805_s17, 256 }
  0x14   : > { %2598 = vmatprep.subr.bf16.mxu0 (!%p191_p9), %v3173_v4  ;;  %2618 = vmatprep.subr.bf16.mxu1 (!%p191_p9), %v3173_v4  ;;  %v2986_v44 = vld [vmem:[%s3856_s3 + $0xc0] sm:$0xff] (!%p191_p9)   ;;  %v2988_v47 = vld [vmem:[%s3856_s3 + $0xc8] sm:$0xff] (!%p191_p9)   ;;  %v2990_v49 = vld [vmem:[%s3856_s3 + $0xd0] sm:$0xff] (!%p191_p9)   ;;  %p3110_p11 = scmp.ne.s32.totalorder (!%p191_p9), %s3805_s17, %s3109_s7 }
  0x15   : > { %s219_s30 = scalar_select %p218_p10, %s3229_s22, 1  ;;  %v2991_v50 = vld [vmem:[%s3856_s3 + $0x98] sm:$0xff]   ;;  %v2993_v52 = vld [vmem:[%s3856_s3 + $0xa0] sm:$0xff]   ;;  %v2995_v54 = vld [vmem:[%s3856_s3 + $0xa8] sm:$0xff]  }
  0x16   : > { %v2992_v51 = vld [vmem:[%s3856_s3 + $0xd8] sm:$0xff]   ;;  %v2994_v53 = vld [vmem:[%s3856_s3 + $0xe0] sm:$0xff]   ;;  %v2996_v55 = vld [vmem:[%s3856_s3 + $0xe8] sm:$0xff]   ;;  %p3111_p12 = pnand %p3110_p11, %p3246_p5  ;;  %s3175_s22 = smov [#allocation2]  }
  0x17   : > { %s2456_s6 = sshll.u32 %s219_s30, 4  ;;  %2599 = vmatpush3.bf16.msra.mxu0 %v2973_v15  ;;  %2619 = vmatpush3.bf16.msra.mxu1 %v2974_v16  ;;  %v2997_v56 = vld [vmem:[%s3856_s3 + $0xb0] sm:$0xff]   ;;  %v2999_v58 = vld [vmem:[%s3856_s3 + $0xb8] sm:$0xff]   ;;  %v3001_v60 = vld [vmem:[%s3856_s3 + $0x100] sm:$0xff]   ;;  %s3810_s30 = scalar_lea.hbm %s3858_s5, %s2457_s23 }
  0x18   : > { %s222_s9 = scalar_lea.vmem %s3853_s0, %s2456_s6  ;;  %2600 = vmatprep.subr.bf16.mxu0 %v3173_v4  ;;  %2620 = vmatprep.subr.bf16.mxu1 %v3173_v4  ;;  %v2998_v57 = vld [vmem:[%s3856_s3 + $0xf0] sm:$0xff]   ;;  %v3000_v59 = vld [vmem:[%s3856_s3 + $0xf8] sm:$0xff]   ;;  %v3002_v61 = vld [vmem:[%s3856_s3 + $0x140] sm:$0xff]   ;;  %s3812_s6 = scalar_lea.sflag [#allocation3], %s215_s14 }
  0x19   : > { %v224_v0 = vld [vmem:[%s222_s9] sm:$0xff]  ;;  %v225_v1 = vld [vmem:[%s222_s9 + $0x8] sm:$0xff]  ;;  %v3007_v2 = vld [vmem:[%s3856_s3 + $0x118] sm:$0xff]   ;;  %p3112_p13 = pneg %p3111_p12  ;;  %s3113_s8 = sshll.u32 %s3175_s22, 4  ;;  %s3114_s8 = int_to_ptr.vmem [resolvable:$false] %s3113_s8 }
  0x1a   : > { %226 = vadd.xlane.f32.xlu0 %v224_v0  ;;  %v3003_v62 = vld [vmem:[%s3856_s3 + $0x108] sm:$0xff]   ;;  %v3008_v3 = vld [vmem:[%s3856_s3 + $0x158] sm:$0xff]   ;;  %v3009_v5 = vld [vmem:[%s3856_s3 + $0x120] sm:$0xff]   ;;  %s3115_s9 = scalar_lea.vmem %s3114_s8, 512  ;;  %p3116_p0 = scmp.lt.s32.totalorder %s3805_s17, %s3114_s8 }
  0x1b   : > { %2601 = vmatpush3.bf16.msra.mxu0 %v2975_v17  ;;  %2621 = vmatpush3.bf16.msra.mxu1 %v2976_v18  ;;  %v3004_v63 = vld [vmem:[%s3856_s3 + $0x148] sm:$0xff]   ;;  %v3010_v6 = vld [vmem:[%s3856_s3 + $0x160] sm:$0xff]   ;;  %v3021_v17 = vld [vmem:[%s3856_s3 + $0x190] sm:$0xff]   ;;  %p3117_p1 = scmp.lt.s32.totalorder %s3115_s9, %s3109_s7 }
  0x1c   : > { %2602 = vmatprep.subr.bf16.mxu0 %v3173_v4  ;;  %2622 = vmatprep.subr.bf16.mxu1 %v3173_v4  ;;  %v3019_v15 = vld [vmem:[%s3856_s3 + $0x188] sm:$0xff]   ;;  %v3022_v18 = vld [vmem:[%s3856_s3 + $0x1d0] sm:$0xff]  }
  0x1d   : > { %v3020_v16 = vld [vmem:[%s3856_s3 + $0x1c8] sm:$0xff]   ;;  %p3118_p2 = por %p3117_p1, %p3116_p0 }
  0x1e   : > { %228 = vadd.xlane.f32.xlu0 %v225_v1 }
  0x1f   : > { %2603 = vmatpush3.bf16.msra.mxu0 %v2977_v19  ;;  %2623 = vmatpush3.bf16.msra.mxu1 %v2978_v20  ;;  %v3023_v19 = vld [vmem:[%s3856_s3 + $0x198] sm:$0xff]   ;;  %p3119_p3 = pnand %p3118_p2, %p3112_p13 }
  0x20   : > { %2604 = vmatprep.subr.bf16.mxu0 %v3173_v4  ;;  %2624 = vmatprep.subr.bf16.mxu1 %v3173_v4  ;;  %v3024_v20 = vld [vmem:[%s3856_s3 + $0x1d8] sm:$0xff]  }
  0x23   : > { %2605 = vmatpush3.bf16.msra.mxu0 %v2979_v21  ;;  %2625 = vmatpush3.bf16.msra.mxu1 %v2980_v22  ;;  %v3025_v21 = vld [vmem:[%s3856_s3 + $0x1a0] sm:$0xff]  }
  0x24   : > { %2606 = vmatprep.subr.bf16.mxu0 %v3173_v4  ;;  %2626 = vmatprep.subr.bf16.mxu1 %v3173_v4  ;;  %v3026_v22 = vld [vmem:[%s3856_s3 + $0x1e0] sm:$0xff]  }
  0x27   : > { %2607 = vmatpush3.bf16.msra.mxu0 %v2981_v23  ;;  %2627 = vmatpush3.bf16.msra.mxu1 %v2982_v24  ;;  %v3027_v23 = vld [vmem:[%s3856_s3 + $0x1a8] sm:$0xff]  }
  0x28   : > { %2608 = vmatprep.subr.bf16.mxu0 %v3173_v4  ;;  %2628 = vmatprep.subr.bf16.mxu1 %v3173_v4  ;;  %v3028_v24 = vld [vmem:[%s3856_s3 + $0x1e8] sm:$0xff]  }
  0x2b   : > { %2609 = vmatpush3.bf16.msra.mxu0 %v2983_v25  ;;  %2629 = vmatpush3.bf16.msra.mxu1 %v2984_v26  ;;  %v3029_v25 = vld [vmem:[%s3856_s3 + $0x1b0] sm:$0xff]  }
  0x2c   : > { %2634 = vmatprep.subr.bf16.mxu0 %v3173_v4  ;;  %2654 = vmatprep.subr.bf16.mxu1 %v3173_v4  ;;  %v3030_v26 = vld [vmem:[%s3856_s3 + $0x1f0] sm:$0xff]  }
  0xa7   : > { %v227_v7 = vpop.xlane.xlu0 %226 }
  0xa8   : > { %v231_v8 = vmul.f32 0.0078125, %v227_v7  ;;  %v3011_v7 = vld [vmem:[%s3856_s3 + $0x128] sm:$0xff]  }
  0xaa   : > { %v233_v9 = vsub.f32 %v224_v0, %v231_v8  ;;  %v3005_v0 = vld [vmem:[%s3856_s3 + $0x110] sm:$0xff]   ;;  %v3012_v8 = vld [vmem:[%s3856_s3 + $0x168] sm:$0xff]  }
  0xab   : > { %v229_v10 = vpop.xlane.xlu0 %228 }
  0xac   : > { %v232_v11 = vmul.f32 0.0078125, %v229_v10  ;;  %v235_v12 = vmul.f32 %v233_v9, %v233_v9  ;;  %v3014_v10 = vld [vmem:[%s3856_s3 + $0x170] sm:$0xff]  }
  0xae   : > { %v234_v13 = vsub.f32 %v225_v1, %v232_v11  ;;  %237 = vadd.xlane.f32.xlu1 %v235_v12  ;;  %v3006_v1 = vld [vmem:[%s3856_s3 + $0x150] sm:$0xff]   ;;  %v3015_v11 = vld [vmem:[%s3856_s3 + $0x138] sm:$0xff]  }
  0xaf   : > { %v3016_v12 = vld [vmem:[%s3856_s3 + $0x178] sm:$0xff]  }
  0xb0   : > { %v236_v14 = vmul.f32 %v234_v13, %v234_v13 }
  0xb2   : > { %239 = vadd.xlane.f32.xlu1 %v236_v14  ;;  %v3018_v14 = vld [vmem:[%s3856_s3 + $0x1c0] sm:$0xff]  }
 0x13b   : > { %v238_v27 = vpop.xlane.xlu1 %237 }
 0x13c   : > { %v241_v28 = vmul.f32 0.0078125, %v238_v27  ;;  %v3031_v27 = vld [vmem:[%s3856_s3 + $0x1b8] sm:$0xff]  }
 0x13e   : > { %v243_v29 = vadd.f32 1e-05, %v241_v28  ;;  %v3032_v28 = vld [vmem:[%s3856_s3 + $0x1f8] sm:$0xff]  }
 0x13f   : > { %v240_v30 = vpop.xlane.xlu1 %239 }
 0x140   : > { %3073 = vrsqrt.f32 %v243_v29  ;;  %v242_v31 = vmul.f32 0.0078125, %v240_v30  ;;  %v3033_v29 = vld [vmem:[%s3856_s3 + $0x200] sm:$0xff]  }
 0x141   : > { %v3034_v30 = vld [vmem:[%s3856_s3 + $0x240] sm:$0xff]  }
 0x142   : > { %v244_v32 = vadd.f32 1e-05, %v242_v31  ;;  %v3035_v31 = vld [vmem:[%s3856_s3 + $0x208] sm:$0xff]  }
 0x144   : > { %3075 = vrsqrt.f32 %v244_v32  ;;  %v3036_v32 = vld [vmem:[%s3856_s3 + $0x248] sm:$0xff]  }
 0x14a   : > { %v3074_v33 = vpop.eup %3073 }
 0x14b   : > { %v247_v34 = vmul.f32 %v3074_v33, %v233_v9  ;;  %v3013_v9 = vld [vmem:[%s3856_s3 + $0x130] sm:$0xff]  }
 0x14c   : > { %v3037_v33 = vld [vmem:[%s3856_s3 + $0x210] sm:$0xff]  }
 0x14d   : > { %v256_v37 = vmul.f32 %v2333_v35, %v247_v34  ;;  %v3038_v34 = vld [vmem:[%s3856_s3 + $0x250] sm:$0xff]  }
 0x14e   : > { %v3076_v36 = vpop.eup %3075 }
 0x14f   : > { %v248_v38 = vmul.f32 %v3076_v36, %v234_v13  ;;  %v265_v41 = vadd.f32 %v2334_v39, %v256_v37  ;;  %v3017_v13 = vld [vmem:[%s3856_s3 + $0x180] sm:$0xff]   ;;  %v3040_v36 = vld [vmem:[%s3856_s3 + $0x258] sm:$0xff]  }
 0x150   : > { %v3041_v37 = vld [vmem:[%s3856_s3 + $0x220] sm:$0xff]  }
 0x151   : > { %v257_v40 = vmul.f32 %v2333_v35, %v248_v38  ;;  %v3039_v35 = vld [vmem:[%s3856_s3 + $0x218] sm:$0xff]   ;;  %v3042_v38 = vld [vmem:[%s3856_s3 + $0x260] sm:$0xff]  }
 0x153   : > { %v266_v42 = vadd.f32 %v2334_v39, %v257_v40  ;;  %v3043_v39 = vld [vmem:[%s3856_s3 + $0x228] sm:$0xff]  }
 0x154   : > { %v3044_v40 = vld [vmem:[%s3856_s3 + $0x268] sm:$0xff]  }
 0x155   : > { %v3343_v45 = vpack.c.bf16 %v266_v42, %v265_v41  ;;  %v3045_v41 = vld [vmem:[%s3856_s3 + $0x230] sm:$0xff]  }
 0x156   : > { %v3046_v42 = vld [vmem:[%s3856_s3 + $0x270] sm:$0xff]  }
 0x157   : > { %2611 = vmatmul.mubr.bf16.vlgmr.msra.gmra.mrb[0].mxu0 %v3343_v45  ;;  %2631 = vmatmul.mubr.bf16.vlgmr.msra.gmra.mrb[0].mxu1 %v3343_v45 }
 0x158   : > { %2635 = vmatpush3.bf16.msra.mxu0 %v2985_v43  ;;  %2655 = vmatpush3.bf16.msra.mxu1 %v2986_v44  ;;  %v3047_v43 = vld [vmem:[%s3856_s3 + $0x238] sm:$0xff]  }
 0x159   : > { %2636 = vmatprep.subr.bf16.mxu0 %v3173_v4  ;;  %2656 = vmatprep.subr.bf16.mxu1 %v3173_v4  ;;  %v3048_v44 = vld [vmem:[%s3856_s3 + $0x278] sm:$0xff]  }
 0x15a   : > { %2650 = vmatprep.mubr.msk.bf16.mxu0 %vm3174_vm0, %v3173_v4  ;;  %2670 = vmatprep.mubr.msk.bf16.mxu1 %vm3174_vm0, %v3173_v4 }
 0x15c   : > { %2637 = vmatpush3.bf16.msra.mxu0 %v2987_v46  ;;  %2657 = vmatpush3.bf16.msra.mxu1 %v2988_v47  ;;  %v3049_v46 = vld [vmem:[%s3856_s3 + $0x280] sm:$0xff]  }
 0x15d   : > { %2638 = vmatprep.subr.bf16.mxu0 %v3173_v4  ;;  %2658 = vmatprep.subr.bf16.mxu1 %v3173_v4  ;;  %v3050_v47 = vld [vmem:[%s3856_s3 + $0x2c0] sm:$0xff]  }
 0x160   : > { %2639 = vmatpush3.bf16.msra.mxu0 %v2989_v48  ;;  %2659 = vmatpush3.bf16.msra.mxu1 %v2990_v49  ;;  %v3051_v48 = vld [vmem:[%s3856_s3 + $0x288] sm:$0xff]  }
 0x161   : > { %2640 = vmatprep.subr.bf16.mxu0 %v3173_v4  ;;  %2660 = vmatprep.subr.bf16.mxu1 %v3173_v4  ;;  %v3052_v49 = vld [vmem:[%s3856_s3 + $0x2c8] sm:$0xff]  }
 0x164   : > { %2641 = vmatpush3.bf16.msra.mxu0 %v2991_v50  ;;  %2661 = vmatpush3.bf16.msra.mxu1 %v2992_v51  ;;  %v3053_v50 = vld [vmem:[%s3856_s3 + $0x290] sm:$0xff]  }
 0x165   : > { %2642 = vmatprep.subr.bf16.mxu0 %v3173_v4  ;;  %2662 = vmatprep.subr.bf16.mxu1 %v3173_v4  ;;  %v3054_v51 = vld [vmem:[%s3856_s3 + $0x2d0] sm:$0xff]  }
 0x168   : > { %2643 = vmatpush3.bf16.msra.mxu0 %v2993_v52  ;;  %2663 = vmatpush3.bf16.msra.mxu1 %v2994_v53  ;;  %v3055_v52 = vld [vmem:[%s3856_s3 + $0x298] sm:$0xff]  }
 0x169   : > { %2644 = vmatprep.subr.bf16.mxu0 %v3173_v4  ;;  %2664 = vmatprep.subr.bf16.mxu1 %v3173_v4  ;;  %v3056_v53 = vld [vmem:[%s3856_s3 + $0x2d8] sm:$0xff]  }
 0x16c   : > { %2645 = vmatpush3.bf16.msra.mxu0 %v2995_v54  ;;  %2665 = vmatpush3.bf16.msra.mxu1 %v2996_v55  ;;  %v3057_v54 = vld [vmem:[%s3856_s3 + $0x2a0] sm:$0xff]  }
 0x16d   : > { %2646 = vmatprep.subr.bf16.mxu0 %v3173_v4  ;;  %2666 = vmatprep.subr.bf16.mxu1 %v3173_v4  ;;  %v3058_v55 = vld [vmem:[%s3856_s3 + $0x2e0] sm:$0xff]  }
 0x170   : > { %2647 = vmatpush3.bf16.msra.mxu0 %v2997_v56  ;;  %2667 = vmatpush3.bf16.msra.mxu1 %v2998_v57  ;;  %v3059_v56 = vld [vmem:[%s3856_s3 + $0x2a8] sm:$0xff]  }
 0x171   : > { %2648 = vmatprep.subr.bf16.mxu0 %v3173_v4  ;;  %2668 = vmatprep.subr.bf16.mxu1 %v3173_v4  ;;  %v3060_v57 = vld [vmem:[%s3856_s3 + $0x2e8] sm:$0xff]  }
 0x174   : > { %2649 = vmatpush3.bf16.msra.mxu0 %v2999_v58  ;;  %2669 = vmatpush3.bf16.msra.mxu1 %v3000_v59  ;;  %v3061_v58 = vld [vmem:[%s3856_s3 + $0x2b0] sm:$0xff]  }
 0x175   : > { %2674 = vmatprep.subr.bf16.mxu0 %v3173_v4  ;;  %2694 = vmatprep.subr.bf16.mxu1 %v3173_v4  ;;  %v3062_v59 = vld [vmem:[%s3856_s3 + $0x2f0] sm:$0xff]  }
 0x177   : > { %2651 = vmatmul.mubr.bf16.vlgmr.msra.gmra.mrb[4].mxu0 %v3343_v45  ;;  %2671 = vmatmul.mubr.bf16.vlgmr.msra.gmra.mrb[4].mxu1 %v3343_v45 }
 0x178   : > { %2675 = vmatpush3.bf16.msra.mxu0 %v3001_v60  ;;  %2695 = vmatpush3.bf16.msra.mxu1 %v3002_v61  ;;  %v3063_v60 = vld [vmem:[%s3856_s3 + $0x2b8] sm:$0xff]  }
 0x179   : > { %2676 = vmatprep.subr.bf16.mxu0 %v3173_v4  ;;  %2696 = vmatprep.subr.bf16.mxu1 %v3173_v4  ;;  %v3064_v61 = vld [vmem:[%s3856_s3 + $0x2f8] sm:$0xff]  }
 0x17a   : > { %2690 = vmatprep.mubr.msk.bf16.mxu0 %vm3174_vm0, %v3173_v4  ;;  %2710 = vmatprep.mubr.msk.bf16.mxu1 %vm3174_vm0, %v3173_v4 }
 0x17c   : > { %2677 = vmatpush3.bf16.msra.mxu0 %v3003_v62  ;;  %2697 = vmatpush3.bf16.msra.mxu1 %v3004_v63 }
 0x17d   : > { %2678 = vmatprep.subr.bf16.mxu0 %v3173_v4  ;;  %2698 = vmatprep.subr.bf16.mxu1 %v3173_v4 }
 0x180   : > { %2679 = vmatpush3.bf16.msra.mxu0 %v3005_v0  ;;  %2699 = vmatpush3.bf16.msra.mxu1 %v3006_v1 }
 0x181   : > { %2680 = vmatprep.subr.bf16.mxu0 %v3173_v4  ;;  %2700 = vmatprep.subr.bf16.mxu1 %v3173_v4 }
 0x184   : > { %2681 = vmatpush3.bf16.msra.mxu0 %v3007_v2  ;;  %2701 = vmatpush3.bf16.msra.mxu1 %v3008_v3 }
 0x185   : > { %2682 = vmatprep.subr.bf16.mxu0 %v3173_v4  ;;  %2702 = vmatprep.subr.bf16.mxu1 %v3173_v4 }
 0x188   : > { %2683 = vmatpush3.bf16.msra.mxu0 %v3009_v5  ;;  %2703 = vmatpush3.bf16.msra.mxu1 %v3010_v6 }
 0x189   : > { %2684 = vmatprep.subr.bf16.mxu0 %v3173_v4  ;;  %2704 = vmatprep.subr.bf16.mxu1 %v3173_v4 }
 0x18c   : > { %2685 = vmatpush3.bf16.msra.mxu0 %v3011_v7  ;;  %2705 = vmatpush3.bf16.msra.mxu1 %v3012_v8 }
 0x18d   : > { %2686 = vmatprep.subr.bf16.mxu0 %v3173_v4  ;;  %2706 = vmatprep.subr.bf16.mxu1 %v3173_v4 }
 0x190   : > { %2687 = vmatpush3.bf16.msra.mxu0 %v3013_v9  ;;  %2707 = vmatpush3.bf16.msra.mxu1 %v3014_v10 }
 0x191   : > { %2688 = vmatprep.subr.bf16.mxu0 %v3173_v4  ;;  %2708 = vmatprep.subr.bf16.mxu1 %v3173_v4 }
 0x194   : > { %2689 = vmatpush3.bf16.msra.mxu0 %v3015_v11  ;;  %2709 = vmatpush3.bf16.msra.mxu1 %v3016_v12 }
 0x195   : > { %2714 = vmatprep.subr.bf16.mxu0 %v3173_v4  ;;  %2734 = vmatprep.subr.bf16.mxu1 %v3173_v4 }
 0x197   : > { %2691 = vmatmul.mubr.bf16.vlgmr.msra.gmra.mrb[8].mxu0 %v3343_v45  ;;  %2711 = vmatmul.mubr.bf16.vlgmr.msra.gmra.mrb[8].mxu1 %v3343_v45 }
 0x198   : > { %2715 = vmatpush3.bf16.msra.mxu0 %v3017_v13  ;;  %2735 = vmatpush3.bf16.msra.mxu1 %v3018_v14 }
 0x199   : > { %2716 = vmatprep.subr.bf16.mxu0 %v3173_v4  ;;  %2736 = vmatprep.subr.bf16.mxu1 %v3173_v4 }
 0x19a   : > { %2730 = vmatprep.mubr.msk.bf16.mxu0 %vm3174_vm0, %v3173_v4  ;;  %2750 = vmatprep.mubr.msk.bf16.mxu1 %vm3174_vm0, %v3173_v4 }
 0x19c   : > { %2717 = vmatpush3.bf16.msra.mxu0 %v3019_v15  ;;  %2737 = vmatpush3.bf16.msra.mxu1 %v3020_v16 }
 0x19d   : > { %2718 = vmatprep.subr.bf16.mxu0 %v3173_v4  ;;  %2738 = vmatprep.subr.bf16.mxu1 %v3173_v4 }
 0x1a0   : > { %2719 = vmatpush3.bf16.msra.mxu0 %v3021_v17  ;;  %2739 = vmatpush3.bf16.msra.mxu1 %v3022_v18 }
 0x1a1   : > { %2720 = vmatprep.subr.bf16.mxu0 %v3173_v4  ;;  %2740 = vmatprep.subr.bf16.mxu1 %v3173_v4 }
 0x1a4   : > { %2721 = vmatpush3.bf16.msra.mxu0 %v3023_v19  ;;  %2741 = vmatpush3.bf16.msra.mxu1 %v3024_v20 }
 0x1a5   : > { %2722 = vmatprep.subr.bf16.mxu0 %v3173_v4  ;;  %2742 = vmatprep.subr.bf16.mxu1 %v3173_v4 }
 0x1a8   : > { %2723 = vmatpush3.bf16.msra.mxu0 %v3025_v21  ;;  %2743 = vmatpush3.bf16.msra.mxu1 %v3026_v22 }
 0x1a9   : > { %2724 = vmatprep.subr.bf16.mxu0 %v3173_v4  ;;  %2744 = vmatprep.subr.bf16.mxu1 %v3173_v4 }
 0x1ac   : > { %2725 = vmatpush3.bf16.msra.mxu0 %v3027_v23  ;;  %2745 = vmatpush3.bf16.msra.mxu1 %v3028_v24 }
 0x1ad   : > { %2726 = vmatprep.subr.bf16.mxu0 %v3173_v4  ;;  %2746 = vmatprep.subr.bf16.mxu1 %v3173_v4 }
 0x1b0   : > { %2727 = vmatpush3.bf16.msra.mxu0 %v3029_v25  ;;  %2747 = vmatpush3.bf16.msra.mxu1 %v3030_v26 }
 0x1b1   : > { %2728 = vmatprep.subr.bf16.mxu0 %v3173_v4  ;;  %2748 = vmatprep.subr.bf16.mxu1 %v3173_v4 }
 0x1b4   : > { %2729 = vmatpush3.bf16.msra.mxu0 %v3031_v27  ;;  %2749 = vmatpush3.bf16.msra.mxu1 %v3032_v28 }
 0x1b5   : > { %2754 = vmatprep.subr.bf16.mxu0 %v3173_v4  ;;  %2774 = vmatprep.subr.bf16.mxu1 %v3173_v4 }
 0x1b7   : > { %2731 = vmatmul.mubr.bf16.vlgmr.msra.gmra.mrb[12].mxu0 %v3343_v45  ;;  %2751 = vmatmul.mubr.bf16.vlgmr.msra.gmra.mrb[12].mxu1 %v3343_v45 }
 0x1b8   : > { %2755 = vmatpush3.bf16.msra.mxu0 %v3033_v29  ;;  %2775 = vmatpush3.bf16.msra.mxu1 %v3034_v30 }
 0x1b9   : > { %2756 = vmatprep.subr.bf16.mxu0 %v3173_v4  ;;  %2776 = vmatprep.subr.bf16.mxu1 %v3173_v4 }
 0x1ba   : > { %2770 = vmatprep.mubr.msk.bf16.mxu0 %vm3174_vm0, %v3173_v4  ;;  %2790 = vmatprep.mubr.msk.bf16.mxu1 %vm3174_vm0, %v3173_v4 }
 0x1bc   : > { %2757 = vmatpush3.bf16.msra.mxu0 %v3035_v31  ;;  %2777 = vmatpush3.bf16.msra.mxu1 %v3036_v32 }
 0x1bd   : > { %2758 = vmatprep.subr.bf16.mxu0 %v3173_v4  ;;  %2778 = vmatprep.subr.bf16.mxu1 %v3173_v4 }
 0x1c0   : > { %2759 = vmatpush3.bf16.msra.mxu0 %v3037_v33  ;;  %2779 = vmatpush3.bf16.msra.mxu1 %v3038_v34 }
 0x1c1   : > { %2760 = vmatprep.subr.bf16.mxu0 %v3173_v4  ;;  %2780 = vmatprep.subr.bf16.mxu1 %v3173_v4 }
 0x1c4   : > { %2761 = vmatpush3.bf16.msra.mxu0 %v3039_v35  ;;  %2781 = vmatpush3.bf16.msra.mxu1 %v3040_v36 }
 0x1c5   : > { %2762 = vmatprep.subr.bf16.mxu0 %v3173_v4  ;;  %2782 = vmatprep.subr.bf16.mxu1 %v3173_v4 }
 0x1c8   : > { %2763 = vmatpush3.bf16.msra.mxu0 %v3041_v37  ;;  %2783 = vmatpush3.bf16.msra.mxu1 %v3042_v38 }
 0x1c9   : > { %2764 = vmatprep.subr.bf16.mxu0 %v3173_v4  ;;  %2784 = vmatprep.subr.bf16.mxu1 %v3173_v4 }
 0x1cc   : > { %2765 = vmatpush3.bf16.msra.mxu0 %v3043_v39  ;;  %2785 = vmatpush3.bf16.msra.mxu1 %v3044_v40 }
 0x1cd   : > { %2766 = vmatprep.subr.bf16.mxu0 %v3173_v4  ;;  %2786 = vmatprep.subr.bf16.mxu1 %v3173_v4 }
 0x1d0   : > { %2767 = vmatpush3.bf16.msra.mxu0 %v3045_v41  ;;  %2787 = vmatpush3.bf16.msra.mxu1 %v3046_v42 }
 0x1d1   : > { %2768 = vmatprep.subr.bf16.mxu0 %v3173_v4  ;;  %2788 = vmatprep.subr.bf16.mxu1 %v3173_v4 }
 0x1d4   : > { %2769 = vmatpush3.bf16.msra.mxu0 %v3047_v43  ;;  %2789 = vmatpush3.bf16.msra.mxu1 %v3048_v44 }
 0x1d5   : > { %2794 = vmatprep.subr.bf16.mxu0 %v3173_v4  ;;  %2814 = vmatprep.subr.bf16.mxu1 %v3173_v4 }
 0x1d7   : > { %2771 = vmatmul.mubr.bf16.vlgmr.msra.gmra.mrb[16].mxu0 %v3343_v45  ;;  %2791 = vmatmul.mubr.bf16.vlgmr.msra.gmra.mrb[16].mxu1 %v3343_v45 }
 0x1d8   : > { %2795 = vmatpush3.bf16.msra.mxu0 %v3049_v46  ;;  %2815 = vmatpush3.bf16.msra.mxu1 %v3050_v47 }
 0x1d9   : > { %2796 = vmatprep.subr.bf16.mxu0 %v3173_v4  ;;  %2816 = vmatprep.subr.bf16.mxu1 %v3173_v4 }
 0x1da   : > { %2810 = vmatprep.mubr.msk.bf16.mxu0 %vm3174_vm0, %v3173_v4  ;;  %2830 = vmatprep.mubr.msk.bf16.mxu1 %vm3174_vm0, %v3173_v4 }
 0x1dc   : > { %2797 = vmatpush3.bf16.msra.mxu0 %v3051_v48  ;;  %2817 = vmatpush3.bf16.msra.mxu1 %v3052_v49 }
 0x1dd   : > { %2798 = vmatprep.subr.bf16.mxu0 %v3173_v4  ;;  %2818 = vmatprep.subr.bf16.mxu1 %v3173_v4 }
 0x1e0   : > { %2799 = vmatpush3.bf16.msra.mxu0 %v3053_v50  ;;  %2819 = vmatpush3.bf16.msra.mxu1 %v3054_v51 }
 0x1e1   : > { %2800 = vmatprep.subr.bf16.mxu0 %v3173_v4  ;;  %2820 = vmatprep.subr.bf16.mxu1 %v3173_v4 }
 0x1e4   : > { %2801 = vmatpush3.bf16.msra.mxu0 %v3055_v52  ;;  %2821 = vmatpush3.bf16.msra.mxu1 %v3056_v53 }
 0x1e5   : > { %2802 = vmatprep.subr.bf16.mxu0 %v3173_v4  ;;  %2822 = vmatprep.subr.bf16.mxu1 %v3173_v4 }
 0x1e8   : > { %2803 = vmatpush3.bf16.msra.mxu0 %v3057_v54  ;;  %2823 = vmatpush3.bf16.msra.mxu1 %v3058_v55 }
 0x1e9   : > { %2804 = vmatprep.subr.bf16.mxu0 %v3173_v4  ;;  %2824 = vmatprep.subr.bf16.mxu1 %v3173_v4 }
 0x1ec   : > { %2805 = vmatpush3.bf16.msra.mxu0 %v3059_v56  ;;  %2825 = vmatpush3.bf16.msra.mxu1 %v3060_v57 }
 0x1ed   : > { %2806 = vmatprep.subr.bf16.mxu0 %v3173_v4  ;;  %2826 = vmatprep.subr.bf16.mxu1 %v3173_v4 }
 0x1f0   : > { %2807 = vmatpush3.bf16.msra.mxu0 %v3061_v58  ;;  %2827 = vmatpush3.bf16.msra.mxu1 %v3062_v59 }
 0x1f1   : > { %2808 = vmatprep.subr.bf16.mxu0 %v3173_v4  ;;  %2828 = vmatprep.subr.bf16.mxu1 %v3173_v4 }
 0x1f4   : > { %2809 = vmatpush3.bf16.msra.mxu0 %v3063_v60  ;;  %2829 = vmatpush3.bf16.msra.mxu1 %v3064_v61 }
 0x1f5   : > { %2834 = vmatprep.subr.bf16.mxu1 %v3173_v4  ;;  %2858 = vmatprep.subr.bf16.mxu0 %v3173_v4 }
 0x1f7   : > { %2811 = vmatmul.mubr.bf16.vlgmr.msra.gmra.mrb[20].mxu0 %v3343_v45  ;;  %2831 = vmatmul.mubr.bf16.vlgmr.msra.gmra.mrb[20].mxu1 %v3343_v45 }
 0x1f8   : > { %2836 = vmatprep.mubr.msk.bf16.mxu1 %vm3174_vm0, %v3173_v4  ;;  %2860 = vmatprep.mubr.msk.bf16.mxu0 %vm3174_vm0, %v3173_v4 }
 0x22a   : > { %v542_v62 = vpop.f32.mrb[0].mxu0  ;;  %v631_v63 = vpop.f32.mrb[0].mxu1 }
 0x22b   : > { %v2612_v0 = vpop.f32.mrb[1].mxu0  ;;  %v2632_v1 = vpop.f32.mrb[1].mxu1 }
 0x22c   : > { %v545_v2 = vpop.f32.mrb[2].mxu0  ;;  %v634_v3 = vpop.f32.mrb[2].mxu1 }
 0x22d   : > { %v1528_v5 = vpack.c.bf16 %v545_v2, %v542_v62  ;;  %v1529_v6 = vpack.c.bf16 %v634_v3, %v631_v63  ;;  %v2613_v7 = vpop.f32.mrb[3].mxu0  ;;  %v2633_v8 = vpop.f32.mrb[3].mxu1 }
 0x24a   : > { %v720_v9 = vpop.f32.mrb[4].mxu0  ;;  %v809_v10 = vpop.f32.mrb[4].mxu1 }
 0x24b   : > { %v2652_v11 = vpop.f32.mrb[5].mxu0  ;;  %v2672_v45 = vpop.f32.mrb[5].mxu1 }
 0x24c   : > { %v723_v12 = vpop.f32.mrb[6].mxu0  ;;  %v812_v13 = vpop.f32.mrb[6].mxu1 }
 0x24d   : > { %v1530_v14 = vpack.c.bf16 %v723_v12, %v720_v9  ;;  %v1531_v15 = vpack.c.bf16 %v812_v13, %v809_v10  ;;  %v2653_v16 = vpop.f32.mrb[7].mxu0  ;;  %v2673_v17 = vpop.f32.mrb[7].mxu1 }
 0x26a   : > { %v898_v18 = vpop.f32.mrb[8].mxu0  ;;  %v987_v19 = vpop.f32.mrb[8].mxu1 }
 0x26b   : > { %v2692_v20 = vpop.f32.mrb[9].mxu0  ;;  %v2712_v21 = vpop.f32.mrb[9].mxu1 }
 0x26c   : > { %v901_v22 = vpop.f32.mrb[10].mxu0  ;;  %v990_v23 = vpop.f32.mrb[10].mxu1 }
 0x26d   : > { %v1532_v24 = vpack.c.bf16 %v901_v22, %v898_v18  ;;  %v1533_v25 = vpack.c.bf16 %v990_v23, %v987_v19  ;;  %v2693_v26 = vpop.f32.mrb[11].mxu0  ;;  %v2713_v27 = vpop.f32.mrb[11].mxu1 }
 0x26f   : > { %v1541_v28 = vsel %vm1536_vm1, %v1532_v24, 0  ;;  %v1588_v29 = vsel %vm1536_vm1, %v1533_v25, 0 }
 0x270   : > { %2835 = vmatpush3.bf16.xpose.msra.mxu1 %v1541_v28 }
 0x271   : > { %2840 = vmatprep.subr.bf16.mxu1 %v3173_v4 }
 0x277   : > { %2837 = vmatmul.mubr.msk.bf16.vlgmr.msra.gmra.mrb[24].mxu1 %vm1536_vm1, %v1528_v5 }
 0x278   : > { %2841 = vmatpush3.bf16.xpose.msra.mxu1 %v1588_v29  ;;  %2842 = vmatprep.mubr.msk.bf16.mxu1 %vm3174_vm0, %v3173_v4 }
 0x279   : > { %2846 = vmatprep.subr.bf16.mxu1 %v3173_v4 }
 0x27f   : > { %2843 = vmatmul.mubr.msk.bf16.vlgmr.msra.gmra.mrb[28].mxu1 %vm1536_vm1, %v1529_v6 }
 0x280   : > { %2848 = vmatprep.mubr.msk.bf16.mxu1 %vm3174_vm0, %v3173_v4 }
 0x28a   : > { %v1076_v30 = vpop.f32.mrb[12].mxu0  ;;  %v1165_v31 = vpop.f32.mrb[12].mxu1 }
 0x28b   : > { %v2732_v32 = vpop.f32.mrb[13].mxu0  ;;  %v2752_v33 = vpop.f32.mrb[13].mxu1 }
 0x28c   : > { %v1079_v34 = vpop.f32.mrb[14].mxu0  ;;  %v1168_v35 = vpop.f32.mrb[14].mxu1 }
 0x28d   : > { %v1534_v36 = vpack.c.bf16 %v1079_v34, %v1076_v30  ;;  %v1535_v37 = vpack.c.bf16 %v1168_v35, %v1165_v31  ;;  %v2733_v38 = vpop.f32.mrb[15].mxu0  ;;  %v2753_v39 = vpop.f32.mrb[15].mxu1 }
 0x28f   : > { %v1635_v40 = vsel %vm1536_vm1, %v1534_v36, 0  ;;  %v1682_v41 = vsel %vm1536_vm1, %v1535_v37, 0 }
 0x290   : > { %2847 = vmatpush3.bf16.xpose.msra.mxu1 %v1635_v40 }
 0x291   : > { %2852 = vmatprep.subr.bf16.mxu1 %v3173_v4 }
 0x297   : > { %2849 = vmatmul.mubr.msk.bf16.vlgmr.msra.gmra.mrb[32].mxu1 %vm1536_vm1, %v1530_v14 }
 0x298   : > { %2853 = vmatpush3.bf16.xpose.msra.mxu1 %v1682_v41  ;;  %2854 = vmatprep.mubr.msk.bf16.mxu1 %vm3174_vm0, %v3173_v4 }
 0x299   : > { %2864 = vmatprep.subr.bf16.mxu1 %v3173_v4 }
 0x29f   : > { %2855 = vmatmul.mubr.msk.bf16.vlgmr.msra.gmra.mrb[36].mxu1 %vm1536_vm1, %v1531_v15 }
 0x2a0   : > { %2866 = vmatprep.mubr.msk.bf16.mxu1 %vm3174_vm0, %v3173_v4 }
 0x2aa   : > { %v1254_v42 = vpop.f32.mrb[16].mxu0  ;;  %v1343_v43 = vpop.f32.mrb[16].mxu1 }
 0x2ab   : > { %v2772_v44 = vpop.f32.mrb[17].mxu0  ;;  %v2792_v46 = vpop.f32.mrb[17].mxu1 }
 0x2ac   : > { %v1257_v47 = vpop.f32.mrb[18].mxu0  ;;  %v1346_v48 = vpop.f32.mrb[18].mxu1 }
 0x2ad   : > { %v1818_v49 = vpack.c.bf16 %v1257_v47, %v1254_v42  ;;  %v1819_v50 = vpack.c.bf16 %v1346_v48, %v1343_v43  ;;  %v2773_v51 = vpop.f32.mrb[19].mxu0  ;;  %v2793_v52 = vpop.f32.mrb[19].mxu1 }
 0x2af   : > { %2859 = vmatpush3.bf16.msra.mxu0 %v1818_v49  ;;  %2865 = vmatpush3.bf16.msra.mxu1 %v1819_v50 }
 0x2b0   : > { %2870 = vmatprep.subr.bf16.mxu0 %v3173_v4  ;;  %2876 = vmatprep.subr.bf16.mxu1 %v3173_v4 }
 0x2ca   : > { %v3717_v53 = vpop.f32.mrb[20].mxu0  ;;  %v3719_v54 = vpop.f32.mrb[20].mxu1 }
 0x2cb   : > { %v2812_v55 = vpop.f32.mrb[21].mxu0  ;;  %v2832_v56 = vpop.f32.mrb[21].mxu1 }
 0x2cc   : > { %v3721_v57 = vpop.f32.mrb[22].mxu0  ;;  %v3723_v58 = vpop.f32.mrb[22].mxu1 }
 0x2cd   : > { %v1820_v59 = vpack.c.bf16 %v3721_v57, %v3717_v53  ;;  %v1821_v60 = vpack.c.bf16 %v3723_v58, %v3719_v54  ;;  %v2813_v61 = vpop.f32.mrb[23].mxu0  ;;  %v2833_v62 = vpop.f32.mrb[23].mxu1  ;;  %v3065_v54 = vld [vmem:[%s3857_s4] sm:$0xff]  }
 0x34a   : > { %v1577_v63 = vpop.f32.mrb[24].mxu1 }
 0x34b   : > { %v2838_v0 = vpop.f32.mrb[25].mxu1  ;;  %v1726_v1 = vsel %vm1725_vm2, %v1577_v63, -inf }
 0x34c   : > { %1727 = vmax.xlane.f32.xlu0 %v1726_v1  ;;  %v1580_v2 = vpop.f32.mrb[26].mxu1 }
 0x34d   : > { %v2839_v3 = vpop.f32.mrb[27].mxu1  ;;  %v1729_v5 = vsel %vm1725_vm2, %v1580_v2, -inf }
 0x34e   : > { %1730 = vmax.xlane.f32.xlu1 %v1729_v5 }
 0x352   : > { %v1624_v6 = vpop.f32.mrb[28].mxu1 }
 0x353   : > { %v2844_v7 = vpop.f32.mrb[29].mxu1  ;;  %v1732_v8 = vsel %vm1725_vm2, %v1624_v6, -inf }
 0x354   : > { %1733 = vmax.xlane.f32.xlu0 %v1732_v8  ;;  %v1627_v9 = vpop.f32.mrb[30].mxu1 }
 0x355   : > { %v2845_v10 = vpop.f32.mrb[31].mxu1  ;;  %v1735_v11 = vsel %vm1725_vm2, %v1627_v9, -inf }
 0x356   : > { %1736 = vmax.xlane.f32.xlu1 %v1735_v11 }
 0x36a   : > { %v1671_v45 = vpop.f32.mrb[32].mxu1 }
 0x36b   : > { %v2850_v12 = vpop.f32.mrb[33].mxu1  ;;  %v1738_v13 = vsel %vm1725_vm2, %v1671_v45, -inf }
 0x36c   : > { %1739 = vmax.xlane.f32.xlu0 %v1738_v13  ;;  %v1674_v14 = vpop.f32.mrb[34].mxu1 }
 0x36d   : > { %v2851_v15 = vpop.f32.mrb[35].mxu1  ;;  %v1741_v16 = vsel %vm1725_vm2, %v1674_v14, -inf }
 0x36e   : > { %1742 = vmax.xlane.f32.xlu1 %v1741_v16 }
 0x372   : > { %v1718_v17 = vpop.f32.mrb[36].mxu1 }
 0x373   : > { %v2856_v18 = vpop.f32.mrb[37].mxu1  ;;  %v1744_v19 = vsel %vm1725_vm2, %v1718_v17, -inf }
 0x374   : > { %1745 = vmax.xlane.f32.xlu0 %v1744_v19  ;;  %v1721_v20 = vpop.f32.mrb[38].mxu1 }
 0x375   : > { %v2857_v21 = vpop.f32.mrb[39].mxu1  ;;  %v1747_v22 = vsel %vm1725_vm2, %v1721_v20, -inf }
 0x376   : > { %1748 = vmax.xlane.f32.xlu1 %v1747_v22 }
 0x3d9   : > { %v1728_v23 = vpop.xlane.xlu0 %1727 }
 0x3da   : > { %v1750_v24 = vsub.f32 %v1577_v63, %v1728_v23 }
 0x3db   : > { %v1731_v25 = vpop.xlane.xlu1 %1730 }
 0x3dc   : > { %v1758_v26 = vmul.f32 1.442695, %v1750_v24  ;;  %v1751_v27 = vsub.f32 %v1580_v2, %v1731_v25 }
 0x3de   : > { %3077 = vpow2.f32 %v1758_v26  ;;  %v1760_v28 = vmul.f32 1.442695, %v1751_v27 }
 0x3e0   : > { %3079 = vpow2.f32 %v1760_v28 }
 0x3e1   : > { %v1734_v29 = vpop.xlane.xlu0 %1733 }
 0x3e2   : > { %v1752_v30 = vsub.f32 %v1624_v6, %v1734_v29  ;;  %v3066_v29 = vld [vmem:[%s3857_s4 + $0x8] sm:$0xff]  }
 0x3e3   : > { %v1737_v31 = vpop.xlane.xlu1 %1736 }
 0x3e4   : > { %v1762_v32 = vmul.f32 1.442695, %v1752_v30  ;;  %v1753_v33 = vsub.f32 %v1627_v9, %v1737_v31 }
 0x3e6   : > { %3081 = vpow2.f32 %v1762_v32  ;;  %v1764_v34 = vmul.f32 1.442695, %v1753_v33  ;;  %v3067_v33 = vld [vmem:[%s3857_s4 + $0x10] sm:$0xff]  }
 0x3e8   : > { %v3078_v35 = vpop.eup %3077  ;;  %3083 = vpow2.f32 %v1764_v34 }
 0x3e9   : > { %v1774_v36 = vsel %vm1725_vm2, %v3078_v35, 0.0 }
 0x3ea   : > { %v3080_v37 = vpop.eup %3079  ;;  %1775 = vadd.xlane.f32.xlu0 %v1774_v36  ;;  %v3068_v36 = vld [vmem:[%s3857_s4 + $0x18] sm:$0xff]  }
 0x3eb   : > { %v1777_v38 = vsel %vm1725_vm2, %v3080_v37, 0.0 }
 0x3ec   : > { %1778 = vadd.xlane.f32.xlu1 %v1777_v38 }
 0x3f0   : > { %v3082_v39 = vpop.eup %3081 }
 0x3f1   : > { %v1780_v40 = vsel %vm1725_vm2, %v3082_v39, 0.0 }
 0x3f2   : > { %v3084_v41 = vpop.eup %3083  ;;  %1781 = vadd.xlane.f32.xlu0 %v1780_v40 }
 0x3f3   : > { %v1783_v42 = vsel %vm1725_vm2, %v3084_v41, 0.0 }
 0x3f4   : > { %1784 = vadd.xlane.f32.xlu1 %v1783_v42  ;;  %v3069_v42 = vld [vmem:[%s3857_s4 + $0x20] sm:$0xff]  }
 0x3f9   : > { %v1740_v43 = vpop.xlane.xlu0 %1739 }
 0x3fa   : > { %v1754_v44 = vsub.f32 %v1671_v45, %v1740_v43  ;;  %v3070_v43 = vld [vmem:[%s3857_s4 + $0x28] sm:$0xff]  }
 0x3fb   : > { %v1743_v46 = vpop.xlane.xlu1 %1742 }
 0x3fc   : > { %v1766_v47 = vmul.f32 1.442695, %v1754_v44  ;;  %v1755_v48 = vsub.f32 %v1674_v14, %v1743_v46 }
 0x3fe   : > { %3085 = vpow2.f32 %v1766_v47  ;;  %v1768_v49 = vmul.f32 1.442695, %v1755_v48  ;;  %v3071_v48 = vld [vmem:[%s3857_s4 + $0x30] sm:$0xff]  }
 0x400   : > { %3087 = vpow2.f32 %v1768_v49 }
 0x401   : > { %v1746_v50 = vpop.xlane.xlu0 %1745 }
 0x402   : > { %v1756_v51 = vsub.f32 %v1718_v17, %v1746_v50 }
 0x403   : > { %v1749_v52 = vpop.xlane.xlu1 %1748 }
 0x404   : > { %v1770_v55 = vmul.f32 1.442695, %v1756_v51  ;;  %v1757_v56 = vsub.f32 %v1721_v20, %v1749_v52  ;;  %v3072_v51 = vld [vmem:[%s3857_s4 + $0x38] sm:$0xff]  }
 0x406   : > { %3089 = vpow2.f32 %v1770_v55  ;;  %v1772_v61 = vmul.f32 1.442695, %v1757_v56 }
 0x408   : > { %v3086_v62 = vpop.eup %3085  ;;  %3091 = vpow2.f32 %v1772_v61 }
 0x409   : > { %v1786_v63 = vsel %vm1725_vm2, %v3086_v62, 0.0 }
 0x40a   : > { %v3088_v0 = vpop.eup %3087  ;;  %1787 = vadd.xlane.f32.xlu0 %v1786_v63 }
 0x40b   : > { %v1789_v1 = vsel %vm1725_vm2, %v3088_v0, 0.0 }
 0x40c   : > { %1790 = vadd.xlane.f32.xlu1 %v1789_v1 }
 0x410   : > { %v3090_v2 = vpop.eup %3089 }
 0x411   : > { %v1792_v3 = vsel %vm1725_vm2, %v3090_v2, 0.0 }
 0x412   : > { %v3092_v5 = vpop.eup %3091  ;;  %1793 = vadd.xlane.f32.xlu0 %v1792_v3 }
 0x413   : > { %v1795_v6 = vsel %vm1725_vm2, %v3092_v5, 0.0 }
 0x414   : > { %1796 = vadd.xlane.f32.xlu1 %v1795_v6 }
 0x477   : > { %v1776_v7 = vpop.xlane.xlu0 %1775 }
 0x478   : > { %3093 = vrcp.f32 %v1776_v7 }
 0x479   : > { %v1779_v8 = vpop.xlane.xlu1 %1778 }
 0x47a   : > { %3095 = vrcp.f32 %v1779_v8 }
 0x47f   : > { %v1782_v9 = vpop.xlane.xlu0 %1781 }
 0x480   : > { %3097 = vrcp.f32 %v1782_v9 }
 0x481   : > { %v1785_v10 = vpop.xlane.xlu1 %1784 }
 0x482   : > { %v3094_v11 = vpop.eup %3093  ;;  %3099 = vrcp.f32 %v1785_v10 }
 0x483   : > { %v1806_v12 = vmul.f32 %v3094_v11, %v3078_v35 }
 0x484   : > { %v3096_v45 = vpop.eup %3095 }
 0x485   : > { %v1807_v13 = vmul.f32 %v3096_v45, %v3080_v37 }
 0x487   : > { %v1814_v14 = vpack.c.bf16 %v1807_v13, %v1806_v12 }
 0x489   : > { %2861 = vmatmul.mubr.msk.bf16.vlgmr.msra.gmra.mrb[24].mxu0 %vm1725_vm2, %v1814_v14 }
 0x48a   : > { %v3098_v15 = vpop.eup %3097  ;;  %2871 = vmatpush3.bf16.msra.mxu0 %v1820_v59  ;;  %2872 = vmatprep.mubr.msk.bf16.mxu0 %vm3174_vm0, %v3173_v4 }
 0x48b   : > { %2882 = vmatprep.subr.bf16.mxu0 %v3173_v4  ;;  %v1808_v17 = vmul.f32 %v3098_v15, %v3082_v39 }
 0x48c   : > { %v3100_v16 = vpop.eup %3099 }
 0x48d   : > { %v1809_v18 = vmul.f32 %v3100_v16, %v3084_v41 }
 0x48f   : > { %v1815_v19 = vpack.c.bf16 %v1809_v18, %v1808_v17 }
 0x491   : > { %2867 = vmatmul.mubr.msk.bf16.vlgmr.msra.gmra.mrb[40].mxu1 %vm1725_vm2, %v1815_v19 }
 0x492   : > { %2877 = vmatpush3.bf16.msra.mxu1 %v1821_v60  ;;  %2878 = vmatprep.mubr.msk.bf16.mxu1 %vm3174_vm0, %v3173_v4 }
 0x497   : > { %v1788_v53 = vpop.xlane.xlu0 %1787 }
 0x498   : > { %3101 = vrcp.f32 %v1788_v53 }
 0x499   : > { %v1791_v57 = vpop.xlane.xlu1 %1790 }
 0x49a   : > { %3103 = vrcp.f32 %v1791_v57 }
 0x49f   : > { %v1794_v59 = vpop.xlane.xlu0 %1793 }
 0x4a0   : > { %3105 = vrcp.f32 %v1794_v59 }
 0x4a1   : > { %v1797_v20 = vpop.xlane.xlu1 %1796 }
 0x4a2   : > { %v3102_v21 = vpop.eup %3101  ;;  %3107 = vrcp.f32 %v1797_v20 }
 0x4a3   : > { %v1810_v23 = vmul.f32 %v3102_v21, %v3086_v62 }
 0x4a4   : > { %v3104_v22 = vpop.eup %3103 }
 0x4a5   : > { %v1811_v24 = vmul.f32 %v3104_v22, %v3088_v0 }
 0x4a7   : > { %v1816_v58 = vpack.c.bf16 %v1811_v24, %v1810_v23 }
 0x4a9   : > { %2873 = vmatmul.mubr.msk.bf16.vlgmr.msra.gmra.mrb[28].mxu0 %vm1725_vm2, %v1816_v58 }
 0x4aa   : > { %v3106_v60 = vpop.eup %3105  ;;  %2883 = vmatpush3.bf16.msra.mxu0 %v3065_v54  ;;  %2886 = vmatprep.mubr.msk.bf16.mxu0 %vm3174_vm0, %v3173_v4 }
 0x4ab   : > { %2884 = vmatprep.subr.bf16.mxu0 %v3173_v4  ;;  %v1812_v26 = vmul.f32 %v3106_v60, %v3090_v2 }
 0x4ac   : > { %v3108_v25 = vpop.eup %3107 }
 0x4ad   : > { %v1813_v27 = vmul.f32 %v3108_v25, %v3092_v5 }
 0x4ae   : > { %2885 = vmatpush3.bf16.msra.mxu0 %v3066_v29 }
 0x4af   : > { %v1817_v28 = vpack.c.bf16 %v1813_v27, %v1812_v26  ;;  %2890 = vmatprep.subr.bf16.mxu0 %v3173_v4 }
 0x4b1   : > { %2879 = vmatmul.mubr.msk.bf16.vlgmr.msra.gmra.mrb[44].mxu1 %vm1725_vm2, %v1817_v28 }
 0x55c   : > { %v1859_v30 = vpop.f32.mrb[24].mxu0 }
 0x55d   : > { %v2862_v31 = vpop.f32.mrb[25].mxu0 }
 0x55e   : > { %v1862_v32 = vpop.f32.mrb[26].mxu0 }
 0x55f   : > { %v1998_v34 = vpack.c.bf16 %v1862_v32, %v1859_v30  ;;  %v2863_v35 = vpop.f32.mrb[27].mxu0 }
 0x561   : > { %2887 = vmatmul.mubr.msk.bf16.vlgmr.msra.gmra.mrb[32].mxu0 %vm1536_vm1, %v1998_v34 }
 0x562   : > { %2891 = vmatpush3.bf16.msra.mxu0 %v3067_v33  ;;  %2894 = vmatprep.mubr.msk.bf16.mxu0 %vm3174_vm0, %v3173_v4 }
 0x563   : > { %2892 = vmatprep.subr.bf16.mxu0 %v3173_v4 }
 0x564   : > { %v1903_v37 = vpop.f32.mrb[40].mxu1 }
 0x565   : > { %v2868_v38 = vpop.f32.mrb[41].mxu1 }
 0x566   : > { %v1906_v39 = vpop.f32.mrb[42].mxu1  ;;  %2893 = vmatpush3.bf16.msra.mxu0 %v3068_v36 }
 0x567   : > { %v1999_v40 = vpack.c.bf16 %v1906_v39, %v1903_v37  ;;  %v2869_v41 = vpop.f32.mrb[43].mxu1  ;;  %2898 = vmatprep.subr.bf16.mxu0 %v3173_v4 }
 0x56d   : > { %2895 = vmatmul.mubr.msk.bf16.vlgmr.msra.gmra.mrb[32].mxu0 %vm1536_vm1, %v1999_v40 }
 0x56e   : > { %2899 = vmatpush3.bf16.msra.mxu0 %v3069_v42  ;;  %2902 = vmatprep.mubr.msk.bf16.mxu0 %vm3174_vm0, %v3173_v4 }
 0x56f   : > { %2900 = vmatprep.subr.bf16.mxu0 %v3173_v4 }
 0x572   : > { %2901 = vmatpush3.bf16.msra.mxu0 %v3070_v43 }
 0x573   : > { %2906 = vmatprep.subr.bf16.mxu0 %v3173_v4 }
 0x57c   : > { %v1947_v44 = vpop.f32.mrb[28].mxu0 }
 0x57d   : > { %v2874_v46 = vpop.f32.mrb[29].mxu0 }
 0x57e   : > { %v1950_v47 = vpop.f32.mrb[30].mxu0 }
 0x57f   : > { %v2000_v49 = vpack.c.bf16 %v1950_v47, %v1947_v44  ;;  %v2875_v50 = vpop.f32.mrb[31].mxu0 }
 0x581   : > { %2903 = vmatmul.mubr.msk.bf16.vlgmr.msra.gmra.mrb[32].mxu0 %vm1536_vm1, %v2000_v49 }
 0x582   : > { %2907 = vmatpush3.bf16.msra.mxu0 %v3071_v48  ;;  %2910 = vmatprep.mubr.msk.bf16.mxu0 %vm3174_vm0, %v3173_v4 }
 0x583   : > { %2908 = vmatprep.subr.bf16.mxu0 %v3173_v4 }
 0x584   : > { %v1991_v52 = vpop.f32.mrb[44].mxu1 }
 0x585   : > { %v2880_v55 = vpop.f32.mrb[45].mxu1 }
 0x586   : > { %v1994_v56 = vpop.f32.mrb[46].mxu1  ;;  %2909 = vmatpush3.bf16.msra.mxu0 %v3072_v51 }
 0x587   : > { %v2001_v61 = vpack.c.bf16 %v1994_v56, %v1991_v52  ;;  %v2881_v62 = vpop.f32.mrb[47].mxu1 }
 0x58d   : > { %2911 = vmatmul.mubr.msk.bf16.vlgmr.msra.gmra.mrb[32].mxu0 %vm1536_vm1, %v2001_v61 }
 0x660   : > { %v2235_v63 = vpop.f32.mrb[32].mxu0 }
 0x661   : > { %2248 = vst [vmem:[%s217_s16] sm:$0xff] %v2235_v63  ;;  %v2912_v4 = vpop.f32.mrb[33].mxu0 }
 0x662   : > { %v2238_v0 = vpop.f32.mrb[34].mxu0 }
 0x663   : > { %2249 = vst [vmem:[%s217_s16 + $0x8] sm:$0xff] %v2238_v0  ;;  %v2913_v1 = vpop.f32.mrb[35].mxu0 }
 0x664   : > { %3122 = shalt.err (!%p3119_p3)
}
 0x665   : > { %s3123_s10 = scalar_lea.hbm %s3810_s30, 256  ;;  %s3127_s13 = scalar_lea.hbm %s3858_s5, 512 }
 0x666   : > { %p3124_p4 = scmp.ne.s32.totalorder %s3810_s30, %s3123_s10  ;;  %p3128_p9 = scmp.lt.u32.totalorder %s3810_s30, %s3858_s5 }
 0x667   : > { %p3129_p10 = scmp.lt.u32.totalorder %s3127_s13, %s3123_s10  ;;  %p3131_p12 = scmp.lt.u32.totalorder %s3123_s10, %s3810_s30 }
 0x668   : > { %p3125_p7 = pnand %p3124_p4, %p3246_p5 }
 0x669   : > { %p3130_p11 = por %p3129_p10, %p3128_p9 }
 0x66a   : > { %p3126_p8 = pneg %p3125_p7 }
 0x66b   : > { %p3132_p13 = por %p3131_p12, %p3130_p11 }
 0x66d   : > { %p3133_p0 = pnand %p3132_p13, %p3126_p8 }
 0x66f   : > { %3136 = shalt.err (!%p3133_p0)
}
 0x670   : > { %s3176_s16 = smov 128   ;;  %s3177_s23 = smov 8  }
 0x671   : > { %2926 = dma.vmem_to_hbm [thread:$0]  (%p3246_p5), %s3805_s17, 256, %s3810_s30, %s3812_s6, %s3176_s16, %s3176_s16, %s3177_s23  }
 0x672 PF: > { %p2932_p1 = scmp.ge.s32.totalorder %s3171_s21, 2  ;;  %s2279_s25 = sand.u32 1, %s3159_s18  }
 0x673   : > { %s2280_s26 = scalar_lea.sflag [#allocation3], %s2279_s25 }
 0x674   : > { %p2929_p2 = pnand %p2932_p1, %p3250_p6 }
 0x676   : > { %3154 = dma.done.wait (!%p2929_p2), %s2280_s26, 256  }
 0x677   : > { %3156 = vsyncadd (!%p2929_p2), %s2280_s26, 4294967040  ;;  %p15_p3 = scmp.ge.s32.totalorder %s3233_s24, 4   ;;  %s3861_s18 = smov %s3163_s19 }
 0x678   : > { %s3862_s19 = smov %s3167_s20  ;;  %s3863_s20 = smov %s3244_s27 }
 0x679   : > { %s3864_s21 = smov %s3233_s24  ;;  %17 = sbr.rel (!%p15_p3) target bundleno = 3 (0x3), region = 75 }
 0x680   :  { %2285 = vsyncpa [#allocation3], 1 }
 0x681   :  { %2287 = vsyncpa [#allocation3 + $0x1], 1 }

</bundles_post_ra>
